<compile_context>
chip_gen: v7x
topology: tpu7x:2x2x1
jax: 0.10.0
libtpu: 0.0.40
codegen_flags: <defaults>
</compile_context>

<pallas_src>
import functools
import math

import jax
import jax.numpy as jnp
from jax.experimental import pallas as pl
from jax.experimental.pallas import tpu as pltpu


def _cdiv(a, b):
    return (a + b - 1) // b


def _round_up(x, m):
    return ((x + m - 1) // m) * m


def _native_sublane(dtype):
    # dtype-native second-minor tile: 8 (4-byte), 16 (2-byte), 32 (1-byte)
    return {4: 8, 2: 16, 1: 32}.get(jnp.dtype(dtype).itemsize, 8)


def _vmem_caps():
    """Returns (working-set budget bytes, compiler vmem limit bytes) for this chip."""
    try:
        cap = int(pltpu.get_tpu_info().vmem_capacity_bytes)
    except Exception:
        cap = 64 * 1024 * 1024  # conservative fallback (v7x per-core physical VMEM)
    budget = int(cap * 0.40)                        # double-buffered tile working set
    limit = min(int(cap * 0.80), 96 * 1024 * 1024)  # raise the 16/32 MiB scoped default
    return budget, limit


# ---------------------------------------------------------------------------
# Kernels
# ---------------------------------------------------------------------------
def _single_k_kernel(x_ref, w_ref, *rest, has_bias):
    # Whole K in one tile: straight MXU dot, bias fused, no accumulator / branches.
    if has_bias:
        b_ref, o_ref = rest
    else:
        (o_ref,) = rest
        b_ref = None
    acc = jnp.dot(x_ref[...], w_ref[...], preferred_element_type=jnp.float32)
    if b_ref is not None:
        acc = acc + b_ref[...].astype(jnp.float32)
    o_ref[...] = acc.astype(o_ref.dtype)


def _multi_k_kernel(x_ref, w_ref, *rest, has_bias, acc_is_out):
    # K is the innermost (arbitrary) grid axis; output block is resident across it.
    if has_bias:
        b_ref = rest[0]
        rest = rest[1:]
    else:
        b_ref = None
    o_ref = rest[0]
    acc_ref = o_ref if acc_is_out else rest[1]  # f32 output -> accumulate in place

    k = pl.program_id(2)

    @pl.when(k == 0)
    def _():
        acc_ref[...] = jnp.zeros_like(acc_ref)

    acc_ref[...] += jnp.dot(x_ref[...], w_ref[...],
                            preferred_element_type=jnp.float32)

    if acc_is_out:
        if b_ref is not None:
            @pl.when(k == pl.num_programs(2) - 1)
            def _():
                o_ref[...] = o_ref[...] + b_ref[...].astype(o_ref.dtype)
    else:
        @pl.when(k == pl.num_programs(2) - 1)
        def _():
            acc = acc_ref[...]
            if b_ref is not None:
                acc = acc + b_ref[...].astype(jnp.float32)
            o_ref[...] = acc.astype(o_ref.dtype)


# ---------------------------------------------------------------------------
# Wrapper
# ---------------------------------------------------------------------------
def mlu_linear(x, weight, bias=None, *, max_tk=None):
    """Pallas implementation of F.linear(x, weight, bias).

    x:      (..., in_features)
    weight: (out_features, in_features)
    bias:   (out_features,) or None
    max_tk: optional cap on the K tile (tuning / test hook)
    """
    out_features, in_features = weight.shape
    assert x.shape[-1] == in_features

    lead_shape = x.shape[:-1]
    m = math.prod(lead_shape) if lead_shape else 1
    n = out_features
    K = in_features
    out_dtype = jnp.result_type(x.dtype, weight.dtype)

    if m == 0:  # zero-sized leading dims: nothing to do
        return jnp.zeros((*lead_shape, n), dtype=out_dtype)

    x2d = x.reshape(m, K)
    # Feed the MXU a plain (M,K)x(K,N) contraction: transpose W once, outside the hot loop.
    w = weight.T  # (K, N)

    x_item = jnp.dtype(x.dtype).itemsize
    w_item = jnp.dtype(weight.dtype).itemsize
    out_item = jnp.dtype(out_dtype).itemsize
    vmem_budget, vmem_limit = _vmem_caps()

    # ---- M tile: dtype-native sublane rounding, capped at 512 ----
    sub = _native_sublane(x.dtype)
    tm = min(512, _round_up(m, sub))

    # ---- N tile: lane-dense (multiple of 128) unless N itself is small ----
    if n <= 128:
        tn = n
    else:
        tn = min(512, (n // 128) * 128)
    grid_m = _cdiv(m, tm)
    grid_n = _cdiv(n, tn)
    # v7x megacore: keep >= 2 tiles on the parallel axes when N permits (harmless elsewhere).
    if grid_m * grid_n < 2 and n > 256:
        tn2 = max(256, _round_up(_cdiv(n, 2), 128))
        if _cdiv(n, tn2) >= 2:
            tn = tn2
            grid_n = _cdiv(n, tn)

    # ---- K tile: as large as the VMEM budget allows; collapse K entirely if it fits ----
    acc_is_out = jnp.dtype(out_dtype) == jnp.dtype(jnp.float32)
    fixed = 2 * tm * tn * out_item + (0 if acc_is_out else tm * tn * 4)
    if bias is not None:
        fixed += 2 * tn * jnp.dtype(bias.dtype).itemsize
    per_k = 2 * (tm * x_item + tn * w_item)  # double-buffered x and w bytes per unit of tk
    tk_cap = max((vmem_budget - fixed) // per_k, 128)
    if max_tk is not None:
        tk_cap = min(tk_cap, max_tk)

    if K <= tk_cap:
        tk = K            # single K step: no accumulator, no revisiting
        k_steps = 1
        k_pad = K
    else:
        k_pad = _round_up(K, 128)
        cap = max((tk_cap // 128) * 128, 128)
        tk = 128
        for cand in range(cap, 127, -128):
            if k_pad % cand == 0:
                tk = cand
                break
        k_steps = k_pad // tk

    # Only the contraction axis ever needs explicit zero padding (reduction correctness).
    if k_pad != K:
        x2d = jnp.pad(x2d, ((0, 0), (0, k_pad - K)))
        w = jnp.pad(w, ((0, k_pad - K), (0, 0)))

    # ---- cost estimate reflecting actual streamed traffic ----
    bytes_accessed = (grid_n * m * k_pad * x_item      # x re-streamed once per N tile
                      + grid_m * k_pad * n * w_item    # W re-streamed once per M tile
                      + m * n * out_item)
    if bias is not None:
        bytes_accessed += grid_m * n * jnp.dtype(bias.dtype).itemsize
    cost = pl.CostEstimate(flops=2 * m * n * K, transcendentals=0,
                           bytes_accessed=int(bytes_accessed))

    has_bias = bias is not None
    if k_steps == 1:
        grid = (grid_m, grid_n)
        x_spec = pl.BlockSpec((tm, tk), lambda i, j: (i, 0))
        w_spec = pl.BlockSpec((tk, tn), lambda i, j: (0, j))
        b_spec = pl.BlockSpec((1, tn), lambda i, j: (0, j))
        out_spec = pl.BlockSpec((tm, tn), lambda i, j: (i, j))
        kernel = functools.partial(_single_k_kernel, has_bias=has_bias)
        scratch = []
        dims = ("parallel", "parallel")
    else:
        grid = (grid_m, grid_n, k_steps)  # K last (reduction axis)
        x_spec = pl.BlockSpec((tm, tk), lambda i, j, k: (i, k))
        w_spec = pl.BlockSpec((tk, tn), lambda i, j, k: (k, j))
        b_spec = pl.BlockSpec((1, tn), lambda i, j, k: (0, j))
        out_spec = pl.BlockSpec((tm, tn), lambda i, j, k: (i, j))  # resident over K
        kernel = functools.partial(_multi_k_kernel, has_bias=has_bias,
                                   acc_is_out=acc_is_out)
        scratch = [] if acc_is_out else [pltpu.VMEM((tm, tn), jnp.float32)]
        dims = ("parallel", "parallel", "arbitrary")

    in_specs = [x_spec, w_spec]
    args = [x2d, w]
    if has_bias:
        in_specs.append(b_spec)
        args.append(bias.reshape(1, n))

    out2d = pl.pallas_call(
        kernel,
        out_shape=jax.ShapeDtypeStruct((m, n), out_dtype),
        grid=grid,
        in_specs=in_specs,
        out_specs=out_spec,
        scratch_shapes=scratch,
        compiler_params=pltpu.CompilerParams(
            dimension_semantics=dims,
            vmem_limit_bytes=vmem_limit,
        ),
        cost_estimate=cost,
    )(*args)

    return out2d.reshape(*lead_shape, n)


def init_mlu_linear_params(key, in_features, out_features, dtype=jnp.float32):
    """Deterministic init matching MLULinear.reset_parameters():
    kaiming_uniform_(weight, a=sqrt(5)) -> U(-1/sqrt(fan_in), 1/sqrt(fan_in)),
    bias -> U(-1/sqrt(fan_in), 1/sqrt(fan_in))."""
    kw, kb = jax.random.split(key)
    bound = 1.0 / math.sqrt(in_features)
    weight = jax.random.uniform(
        kw, (out_features, in_features), dtype=dtype, minval=-bound, maxval=bound
    )
    bias = jax.random.uniform(
        kb, (out_features,), dtype=dtype, minval=-bound, maxval=bound
    )
    return weight, bias


if __name__ == "__main__":
    # TODO(synk): quantized MLU path (torch.ops.torch_mlu.linear with scale /
    # quantized_mode) and the observer/state-dict machinery are device/export
    # specific and not part of the float forward pass.
    key = jax.random.PRNGKey(0)
    k_x, k_p, k_x2, k_p2 = jax.random.split(key, 4)

    # --- module-consistent small shapes: batch=2, seq=8, in_features=32, out_features=64 ---
    in_features, out_features = 32, 64
    x = jax.random.normal(k_x, (2, 8, in_features), dtype=jnp.float32)
    weight, bias = init_mlu_linear_params(k_p, in_features, out_features)

    out = jax.block_until_ready(mlu_linear(x, weight, bias))
    ref = jnp.einsum("bsk,nk->bsn", x, weight) + bias
    assert out.shape == (2, 8, out_features)
    assert jnp.allclose(out, ref, atol=1e-5, rtol=1e-5)

    # bias-free path (MLULinear(bias=False))
    out_nb = jax.block_until_ready(mlu_linear(x, weight, None))
    ref_nb = jnp.einsum("bsk,nk->bsn", x, weight)
    assert jnp.allclose(out_nb, ref_nb, atol=1e-5, rtol=1e-5)

    # --- forced multi-step K path, f32: accumulate directly in the resident output ---
    in3, out3 = 256, 256
    x3 = jax.random.normal(k_x2, (2, 8, in3), dtype=jnp.float32)
    w3, b3 = init_mlu_linear_params(k_p2, in3, out3)
    out_mk = jax.block_until_ready(mlu_linear(x3, w3, b3, max_tk=128))
    ref_mk = jnp.einsum("bsk,nk->bsn", x3, w3) + b3
    assert jnp.allclose(out_mk, ref_mk, atol=5e-3, rtol=5e-3)

    # --- forced multi-step K path, bf16 in/out: f32 VMEM scratch accumulator ---
    xb, wb, bb = (x3.astype(jnp.bfloat16), w3.astype(jnp.bfloat16),
                  b3.astype(jnp.bfloat16))
    out_bf = jax.block_until_ready(mlu_linear(xb, wb, bb, max_tk=128))
    ref_bf = jnp.einsum("bsk,nk->bsn", xb.astype(jnp.float32),
                        wb.astype(jnp.float32)) + bb.astype(jnp.float32)
    assert out_bf.dtype == jnp.bfloat16
    assert jnp.allclose(out_bf.astype(jnp.float32), ref_bf, atol=3e-2, rtol=3e-2)

    print("KERNEL_OK")
</pallas_src>

<mosaic_0001>
module attributes {stable_mosaic.version = 11 : i64} {
  func.func @_single_k_kernel(%arg0: i32, %arg1: i32, %arg2: memref<16x32xf32, #tpu.memory_space<vmem>>, %arg3: memref<32x64xf32, #tpu.memory_space<vmem>>, %arg4: memref<1x64xf32, #tpu.memory_space<vmem>>, %arg5: memref<16x64xf32, #tpu.memory_space<vmem>>) attributes {dimension_semantics = [#tpu.dimension_semantics<parallel>, #tpu.dimension_semantics<parallel>], iteration_bounds = array<i64: 1, 1>, scalar_prefetch = 0 : i64, scratch_operands = 0 : i64, tpu.core_type = #tpu.core_type<tc>, window_params = [{transform_indices = @transform_0, window_bounds = array<i64: 16, 32>}, {transform_indices = @transform_1, window_bounds = array<i64: 32, 64>}, {transform_indices = @transform_2, window_bounds = array<i64: 1, 64>}, {transform_indices = @transform_3, window_bounds = array<i64: 16, 64>}]} {
    %c0 = arith.constant 0 : index
    %c0_0 = arith.constant 0 : index
    %0 = vector.load %arg2[%c0, %c0_0] : memref<16x32xf32, #tpu.memory_space<vmem>>, vector<16x32xf32>
    %c0_1 = arith.constant 0 : index
    %c0_2 = arith.constant 0 : index
    %1 = vector.load %arg3[%c0_1, %c0_2] : memref<32x64xf32, #tpu.memory_space<vmem>>, vector<32x64xf32>
    %cst = arith.constant dense<0.000000e+00> : vector<16x64xf32>
    %2 = tpu.matmul %0, %1, %cst {dimension_numbers = #tpu.dot_dimension_numbers<[1], [0], [0], [1], [0, 0, 1, 1], [], []>} : vector<16x32xf32>, vector<32x64xf32>, vector<16x64xf32> -> vector<16x64xf32>
    %c0_3 = arith.constant 0 : index
    %c0_4 = arith.constant 0 : index
    %3 = vector.load %arg4[%c0_3, %c0_4] : memref<1x64xf32, #tpu.memory_space<vmem>>, vector<1x64xf32>
    %4 = vector.broadcast %3 : vector<1x64xf32> to vector<16x64xf32>
    %5 = arith.addf %2, %4 : vector<16x64xf32>
    %c0_5 = arith.constant 0 : index
    %c0_6 = arith.constant 0 : index
    %6 = vector.load %arg5[%c0_5, %c0_6] : memref<16x64xf32, #tpu.memory_space<vmem>>, vector<16x64xf32>
    tpu.vector_store %arg5[%c0_5, %c0_6], %5 {strides = array<i32>} : memref<16x64xf32, #tpu.memory_space<vmem>>, vector<16x64xf32>,
    return
  }
  func.func @transform_0(%arg0: i32, %arg1: i32) -> (i32, i32) {
    %c0_i32 = arith.constant 0 : i32
    %c0_i32_0 = arith.constant 0 : i32
    return %arg0, %c0_i32 : i32, i32
  }
  func.func @transform_1(%arg0: i32, %arg1: i32) -> (i32, i32) {
    %c0_i32 = arith.constant 0 : i32
    %c0_i32_0 = arith.constant 0 : i32
    return %c0_i32, %arg1 : i32, i32
  }
  func.func @transform_2(%arg0: i32, %arg1: i32) -> (i32, i32) {
    %c0_i32 = arith.constant 0 : i32
    %c0_i32_0 = arith.constant 0 : i32
    return %c0_i32, %arg1 : i32, i32
  }
  func.func @transform_3(%arg0: i32, %arg1: i32) -> (i32, i32) {
    %c0_i32 = arith.constant 0 : i32
    return %arg0, %arg1 : i32, i32
  }
}

</mosaic_0001>

<bundles_post_ra>
// kernel: tpu_custom_call.1
= control target key start
LH: loop header
LB: loop body
LE: loop exit
PB: predicated region body
PF: predicated region fallthrough
CT: control target
= control target key end

     0   :  { %8 = vsyncpa [#allocation3], 0  ;;  %s337_s0 = inlined_call_operand.hbm [shape: f32[16,32], index: 0, kind: input, shape index: {}]   ;;  %s338_s1 = inlined_call_operand.hbm [shape: f32[32,64], index: 1, kind: input, shape index: {}]   ;;  %s339_s2 = inlined_call_operand.vmem [shape: f32[1,64], index: 2, kind: input, shape index: {}]   ;;  %s340_s3 = inlined_call_operand.hbm [shape: f32[16,64], index: 3, kind: output, shape index: {}]  }
   0x1   :  { %9 = vsyncpa [#allocation6], 0 }
   0x2   :  { %10 = vsyncpa [#allocation4], 0  ;;  %s264_s12 = smov [#allocation2]   ;;  %s192_s16 = scalar_lea.hbm %s337_s0, 256 }
   0x3   :  { %s16_s13 = sshll.u32 %s264_s12, 4  ;;  %p193_p0 = scmp.ne.s32.totalorder %s337_s0, %s192_s16  ;;  %s17_s13 = int_to_ptr.vmem [resolvable:$true] %s16_s13 }
   0x4   :  { %p196_p1 = scmp.lt.u32.totalorder %s192_s16, %s337_s0 }
   0x6   :  { %p198_p2 = pnand %p196_p1, %p193_p0 }
   0x8   :  { %201 = shalt.err (!%p198_p2)
}
   0x9   :  { %s202_s21 = scalar_lea.vmem %s17_s13, 256  ;;  %p207_p4 = scmp.lt.s32.totalorder %s17_s13, %s17_s13 }
   0xa   :  { %p203_p3 = scmp.ne.s32.totalorder %s17_s13, %s202_s21  ;;  %p208_p5 = scmp.lt.s32.totalorder %s202_s21, %s202_s21 }
   0xc   :  { %p209_p6 = por %p208_p5, %p207_p4 }
   0xe   :  { %p210_p7 = pnand %p209_p6, %p203_p3 }
  0x10   :  { %213 = shalt.err (!%p210_p7)
}
  0x11   :  { %s265_s22 = smov 128   ;;  %s266_s23 = smov 8  }
  0x12   :  { %22 = dma.hbm_to_vmem [thread:$0]  %s337_s0, 256, %s17_s13, [#allocation3], %s265_s22, %s265_s22, %s266_s23  }
  0x13   :  { %s267_s26 = smov [#allocation5]   ;;  %s214_s30 = scalar_lea.hbm %s338_s1, 512 }
  0x14   :  { %s28_s27 = sshll.u32 %s267_s26, 4  ;;  %p215_p8 = scmp.ne.s32.totalorder %s338_s1, %s214_s30  ;;  %s29_s27 = int_to_ptr.vmem [resolvable:$true] %s28_s27 }
  0x15   :  { %p218_p9 = scmp.lt.u32.totalorder %s214_s30, %s338_s1 }
  0x17   :  { %p220_p10 = pnand %p218_p9, %p215_p8 }
  0x19   :  { %223 = shalt.err (!%p220_p10)
}
  0x1a   :  { %s224_s8 = scalar_lea.vmem %s29_s27, 512  ;;  %p229_p12 = scmp.lt.s32.totalorder %s29_s27, %s29_s27 }
  0x1b   :  { %p225_p11 = scmp.ne.s32.totalorder %s29_s27, %s224_s8  ;;  %p230_p13 = scmp.lt.s32.totalorder %s224_s8, %s224_s8 }
  0x1d   :  { %p231_p0 = por %p230_p13, %p229_p12 }
  0x1f   :  { %p232_p1 = pnand %p231_p0, %p225_p11 }
  0x21   :  { %235 = shalt.err (!%p232_p1)
}
  0x22   :  { %34 = dma.hbm_to_vmem [thread:$0]  %s338_s1, 512, %s29_s27, [#allocation6], %s265_s22, %s265_s22, %s266_s23  }
  0x23   :  { %258 = dma.done.wait [#allocation3], 256  }
  0x24   :  { %259 = vsyncadd [#allocation3], 4294967040 }
  0x25   :  { %260 = dma.done.wait [#allocation6], 512  }
  0x26   :  { %261 = vsyncadd [#allocation6], 4294966784  ;;  %vm56_vm0 = vcmask 261120   ;;  %v45_v0 = vld [vmem:[#allocation5] sm:$0xff]  ;;  %v46_v1 = vld [vmem:[#allocation5 + $0x8] sm:$0xff]  ;;  %s268_s11 = smov [#allocation7]  }
  0x27   :  { %v47_v2 = vld [vmem:[#allocation5 + $0x10] sm:$0xff]  ;;  %v179_v3 = vpack.c.bf16 %v46_v1, %v45_v0  ;;  %v48_v4 = vld [vmem:[#allocation5 + $0x18] sm:$0xff]  ;;  %s146_s12 = sshll.u32 %s268_s11, 4  ;;  %vm138_vm1 = vcmask 523264   ;;  %s147_s12 = int_to_ptr.vmem [resolvable:$true] %s146_s12 }
  0x28   :  { %v43_v5 = vld [vmem:[#allocation2] sm:$0xff]  ;;  %v183_v6 = vpack.c.bf16 %v48_v4, %v47_v2  ;;  %v44_v7 = vld [vmem:[#allocation2 + $0x8] sm:$0xff]  ;;  %s236_s13 = scalar_lea.vmem %s147_s12, 256  ;;  %p241_p3 = scmp.lt.s32.totalorder %s147_s12, %s147_s12 }
  0x29   :  { %176 = vmatprep.mubr.msk.f32.mxu0 %vm56_vm0, %v43_v5  ;;  %180 = vmatprep.subr.bf16.mxu0 %v179_v3  ;;  %v159_v8 = vld [vmem:[%s339_s2] ss:$0 sm:$0xff]  ;;  %p237_p2 = scmp.ne.s32.totalorder %s147_s12, %s236_s13  ;;  %p242_p4 = scmp.lt.s32.totalorder %s236_s13, %s236_s13 }
  0x2a   :  { %182 = vmatpush3.bf16.msra.mxu0 %v179_v3 }
  0x2b   :  { %184 = vmatprep.subr.bf16.mxu0 %v183_v6  ;;  %p243_p5 = por %p242_p4, %p241_p3 }
  0x2d   :  { %p244_p6 = pnand %p243_p5, %p237_p2 }
  0x2e   :  { %186 = vmatpush3.bf16.msra.mxu0 %v183_v6 }
  0x31   :  { %177 = vmatmul.mubr.msk.f32.vlgmr.msra.gmra.mrb[0].mxu0 %vm56_vm0, %v44_v7 }
 0x104   :  { %v178_v9 = vpop.f32.mrb[0].mxu0 }
 0x105   :  { %v135_v10 = vadd.f32 %v178_v9, %v159_v8  ;;  %v129_v11 = vpop.f32.mrb[1].mxu0 }
 0x106   :  { %v130_v12 = vadd.f32 %v159_v8, %v129_v11 }
 0x107   :  { %140 = vst.msk [vmem:[#allocation7 + $0x8] sm:$0xff] %vm138_vm1, %v135_v10 }
 0x108   :  { %139 = vst.msk [vmem:[#allocation7] sm:$0xff] %vm138_vm1, %v130_v12 }
 0x109   :  { %247 = shalt.err (!%p244_p6)
}
 0x10a   :  { %s248_s2 = scalar_lea.hbm %s340_s3, 256 }
 0x10b   :  { %p249_p7 = scmp.ne.s32.totalorder %s340_s3, %s248_s2  ;;  %p252_p8 = scmp.lt.u32.totalorder %s248_s2, %s340_s3 }
 0x10d   :  { %p254_p9 = pnand %p252_p8, %p249_p7 }
 0x10f   :  { %257 = shalt.err (!%p254_p9)
}
 0x110   :  { %152 = dma.vmem_to_hbm [thread:$0]  %s147_s12, 256, %s340_s3, [#allocation4], %s265_s22, %s265_s22, %s266_s23  }
 0x111   :  { %262 = dma.done.wait [#allocation4], 256  }
 0x112   :  { %263 = vsyncadd [#allocation4], 4294967040 }
 0x113   :  { %156 = vsyncpa [#allocation3], 1 }
 0x114   :  { %157 = vsyncpa [#allocation6], 1 }
 0x115   :  { %158 = vsyncpa [#allocation4], 1 }

</bundles_post_ra>
